<compile_context>
chip_gen: v5e
topology: v5e:2x2
jax: 0.10.0
libtpu: 0.0.40
codegen_flags: <defaults>
</compile_context>

<pallas_src>
import jax
import jax.numpy as jnp
from jax.experimental import pallas as pl
from jax.experimental.pallas import tpu as pltpu

HID_PAD = 128   # hidden dim 20  -> padded to one full lane width
OUT_PAD = 128   # output dim 2   -> padded to one full lane width


def xor_net_kernel(x_ref, w1_ref, b1_ref, w2_ref, b2_ref, o_ref):
    # x_ref: (block_b, 2)  w1_ref: (2, 128)  b1_ref: (1, 128)
    # w2_ref: (128, 128)   b2_ref: (1, 128)  o_ref: (block_b, 128)
    x = x_ref[...].astype(jnp.float32)

    # l1: Linear(2, 20) as two VPU broadcast-FMAs (K=2 would waste the MXU).
    # Padded hidden columns (20..127) see zero weights/bias -> stay exactly 0.
    h = (x[:, 0:1] * w1_ref[0:1, :]
         + x[:, 1:2] * w1_ref[1:2, :]
         + b1_ref[...])                                   # (block_b, 128)

    # l2: ReLU (padded columns remain 0).
    h = jnp.maximum(h, 0.0)

    # l3: Linear(20, 2) as a lane-dense 128x128 MXU matmul; padded rows of w2
    # are zero, padded output columns are zero.
    y = jnp.dot(h, w2_ref[...], preferred_element_type=jnp.float32)
    y = y + b2_ref[...]                                   # (block_b, 128)

    # l4: Sigmoid — exp + reciprocal go to the EUP slot, not a VALU divide.
    o_ref[...] = jax.nn.sigmoid(y).astype(o_ref.dtype)


def prepare_params(w1, b1, w2, b2):
    """Pre-pad the (pre-transposed) weights once so no per-call relayout.

    w1: (2, 20), b1: (1, 20), w2: (20, 2), b2: (1, 2)  — nn.Linear weights
    stored transposed so the kernel computes y = x @ W + b.
    """
    din, dh = w1.shape
    dh2, dout = w2.shape
    w1p = jnp.zeros((din, HID_PAD), jnp.float32).at[:, :dh].set(w1)
    b1p = jnp.zeros((1, HID_PAD), jnp.float32).at[:, :dh].set(b1)
    w2p = jnp.zeros((HID_PAD, OUT_PAD), jnp.float32).at[:dh2, :dout].set(w2)
    b2p = jnp.zeros((1, OUT_PAD), jnp.float32).at[:, :dout].set(b2)
    return w1p, b1p, w2p, b2p


def xor_net_forward(x, w1p, b1p, w2p, b2p, *, block_b=1024):
    """x: (B, 2) f32; padded params from prepare_params. Returns (B, 2) f32."""
    B, din = x.shape

    # Batch tile: multiple of 8 sublanes, capped at block_b rows so the
    # per-tile VMEM footprint stays small even on v7x (64 MiB physical).
    block_b = min(block_b, pl.cdiv(B, 8) * 8)
    block_b = max(8, (block_b // 8) * 8)
    B_pad = pl.cdiv(B, block_b) * block_b
    if B_pad != B:
        x = jnp.pad(x, ((0, B_pad - B), (0, 0)))

    out = pl.pallas_call(
        xor_net_kernel,
        out_shape=jax.ShapeDtypeStruct((B_pad, OUT_PAD), jnp.float32),
        grid=(B_pad // block_b,),
        in_specs=[
            # Batch-tiled input stream (everything below lives in VMEM).
            pl.BlockSpec((block_b, din), lambda i: (i, 0)),
            # Small weights: full array, same block every grid step.
            pl.BlockSpec(w1p.shape, lambda i: (0, 0)),
            pl.BlockSpec(b1p.shape, lambda i: (0, 0)),
            pl.BlockSpec(w2p.shape, lambda i: (0, 0)),
            pl.BlockSpec(b2p.shape, lambda i: (0, 0)),
        ],
        # Lane-dense (multiple-of-128) output tile -> unmasked stores.
        out_specs=pl.BlockSpec((block_b, OUT_PAD), lambda i: (i, 0)),
        compiler_params=pltpu.CompilerParams(
            dimension_semantics=("parallel",),  # shards batch across TCs on v7x
        ),
    )(x, w1p, b1p, w2p, b2p)

    # Strip the batch padding and the zero-padded output lanes.
    return out[:B, :2]


if __name__ == "__main__":
    B = 8
    key = jax.random.PRNGKey(0)
    kx, k1, k2, k3, k4 = jax.random.split(key, 5)

    # Small batch of 2-feature XOR-style inputs.
    x = jax.random.uniform(kx, (B, 2), jnp.float32)

    # Deterministic init mimicking PyTorch nn.Linear default
    # (uniform(-1/sqrt(fan_in), 1/sqrt(fan_in))), stored pre-transposed.
    bound1 = 1.0 / jnp.sqrt(2.0)    # l1: fan_in = 2
    bound2 = 1.0 / jnp.sqrt(20.0)   # l3: fan_in = 20
    w1 = jax.random.uniform(k1, (2, 20), jnp.float32, -bound1, bound1)
    b1 = jax.random.uniform(k2, (1, 20), jnp.float32, -bound1, bound1)
    w2 = jax.random.uniform(k3, (20, 2), jnp.float32, -bound2, bound2)
    b2 = jax.random.uniform(k4, (1, 2), jnp.float32, -bound2, bound2)

    # Pad once; reuse across calls (no per-call relayout).
    w1p, b1p, w2p, b2p = prepare_params(w1, b1, w2, b2)

    out = xor_net_forward(x, w1p, b1p, w2p, b2p)
    out = jax.block_until_ready(out)

    # Pure-JAX reference of the same forward pass (unpadded weights).
    h_ref = jnp.maximum(x @ w1 + b1, 0.0)
    ref = jax.nn.sigmoid(h_ref @ w2 + b2)
    assert out.shape == (B, 2)
    assert jnp.allclose(out, ref, atol=1e-5), "mismatch vs reference"

    print("KERNEL_OK")
</pallas_src>

<mosaic_0001>
module attributes {stable_mosaic.version = 11 : i64} {
  func.func @xor_net_kernel(%arg0: i32, %arg1: memref<8x2xf32, #tpu.memory_space<vmem>>, %arg2: memref<2x128xf32, #tpu.memory_space<vmem>>, %arg3: memref<1x128xf32, #tpu.memory_space<vmem>>, %arg4: memref<128x128xf32, #tpu.memory_space<vmem>>, %arg5: memref<1x128xf32, #tpu.memory_space<vmem>>, %arg6: memref<8x128xf32, #tpu.memory_space<vmem>>) attributes {dimension_semantics = [#tpu.dimension_semantics<parallel>], iteration_bounds = array<i64: 1>, scalar_prefetch = 0 : i64, scratch_operands = 0 : i64, tpu.core_type = #tpu.core_type<tc>, window_params = [{transform_indices = @transform_0, window_bounds = array<i64: 8, 2>}, {pipeline_mode = #tpu.pipeline_mode<synchronous>, transform_indices = @transform_1, window_bounds = array<i64: 2, 128>}, {pipeline_mode = #tpu.pipeline_mode<synchronous>, transform_indices = @transform_2, window_bounds = array<i64: 1, 128>}, {pipeline_mode = #tpu.pipeline_mode<synchronous>, transform_indices = @transform_3, window_bounds = array<i64: 128, 128>}, {pipeline_mode = #tpu.pipeline_mode<synchronous>, transform_indices = @transform_4, window_bounds = array<i64: 1, 128>}, {transform_indices = @transform_5, window_bounds = array<i64: 8, 128>}]} {
    %c0 = arith.constant 0 : index
    %c0_0 = arith.constant 0 : index
    %0 = vector.load %arg1[%c0, %c0_0] : memref<8x2xf32, #tpu.memory_space<vmem>>, vector<8x2xf32>
    %1 = vector.extract_strided_slice %0 {offsets = [0, 0], sizes = [8, 1], strides = [1, 1]} : vector<8x2xf32> to vector<8x1xf32>
    %c0_1 = arith.constant 0 : index
    %c0_2 = arith.constant 0 : index
    %2 = vector.load %arg2[%c0_1, %c0_2] : memref<2x128xf32, #tpu.memory_space<vmem>>, vector<1x128xf32>
    %3 = vector.broadcast %1 : vector<8x1xf32> to vector<8x128xf32>
    %4 = vector.broadcast %2 : vector<1x128xf32> to vector<8x128xf32>
    %5 = arith.mulf %3, %4 : vector<8x128xf32>
    %6 = vector.extract_strided_slice %0 {offsets = [0, 1], sizes = [8, 1], strides = [1, 1]} : vector<8x2xf32> to vector<8x1xf32>
    %c1 = arith.constant 1 : index
    %c0_3 = arith.constant 0 : index
    %7 = vector.load %arg2[%c1, %c0_3] : memref<2x128xf32, #tpu.memory_space<vmem>>, vector<1x128xf32>
    %8 = vector.broadcast %6 : vector<8x1xf32> to vector<8x128xf32>
    %9 = vector.broadcast %7 : vector<1x128xf32> to vector<8x128xf32>
    %10 = arith.mulf %8, %9 : vector<8x128xf32>
    %11 = arith.addf %5, %10 : vector<8x128xf32>
    %c0_4 = arith.constant 0 : index
    %c0_5 = arith.constant 0 : index
    %12 = vector.load %arg3[%c0_4, %c0_5] : memref<1x128xf32, #tpu.memory_space<vmem>>, vector<1x128xf32>
    %13 = vector.broadcast %12 : vector<1x128xf32> to vector<8x128xf32>
    %14 = arith.addf %11, %13 : vector<8x128xf32>
    %cst = arith.constant 0.000000e+00 : f32
    %15 = vector.broadcast %cst : f32 to vector<8x128xf32>
    %16 = arith.maximumf %14, %15 : vector<8x128xf32>
    %c0_6 = arith.constant 0 : index
    %c0_7 = arith.constant 0 : index
    %17 = vector.load %arg4[%c0_6, %c0_7] : memref<128x128xf32, #tpu.memory_space<vmem>>, vector<128x128xf32>
    %cst_8 = arith.constant dense<0.000000e+00> : vector<8x128xf32>
    %18 = tpu.matmul %16, %17, %cst_8 {dimension_numbers = #tpu.dot_dimension_numbers<[1], [0], [0], [1], [0, 0, 1, 1], [], []>} : vector<8x128xf32>, vector<128x128xf32>, vector<8x128xf32> -> vector<8x128xf32>
    %c0_9 = arith.constant 0 : index
    %c0_10 = arith.constant 0 : index
    %19 = vector.load %arg5[%c0_9, %c0_10] : memref<1x128xf32, #tpu.memory_space<vmem>>, vector<1x128xf32>
    %20 = vector.broadcast %19 : vector<1x128xf32> to vector<8x128xf32>
    %21 = arith.addf %18, %20 : vector<8x128xf32>
    %22 = arith.negf %21 : vector<8x128xf32>
    %23 = math.exp %22 : vector<8x128xf32>
    %cst_11 = arith.constant 1.000000e+00 : f32
    %24 = vector.broadcast %cst_11 : f32 to vector<8x128xf32>
    %25 = arith.addf %24, %23 : vector<8x128xf32>
    %26 = arith.divf %24, %25 : vector<8x128xf32>
    %c0_12 = arith.constant 0 : index
    %c0_13 = arith.constant 0 : index
    %27 = vector.load %arg6[%c0_12, %c0_13] : memref<8x128xf32, #tpu.memory_space<vmem>>, vector<8x128xf32>
    tpu.vector_store %arg6[%c0_12, %c0_13], %26 {strides = array<i32>} : memref<8x128xf32, #tpu.memory_space<vmem>>, vector<8x128xf32>,
    return
  }
  func.func @transform_0(%arg0: i32) -> (i32, i32) {
    %c0_i32 = arith.constant 0 : i32
    %c0_i32_0 = arith.constant 0 : i32
    return %arg0, %c0_i32 : i32, i32
  }
  func.func @transform_1(%arg0: i32) -> (i32, i32) {
    %c0_i32 = arith.constant 0 : i32
    %c0_i32_0 = arith.constant 0 : i32
    %c0_i32_1 = arith.constant 0 : i32
    return %c0_i32, %c0_i32_0 : i32, i32
  }
  func.func @transform_2(%arg0: i32) -> (i32, i32) {
    %c0_i32 = arith.constant 0 : i32
    %c0_i32_0 = arith.constant 0 : i32
    %c0_i32_1 = arith.constant 0 : i32
    return %c0_i32, %c0_i32_0 : i32, i32
  }
  func.func @transform_3(%arg0: i32) -> (i32, i32) {
    %c0_i32 = arith.constant 0 : i32
    %c0_i32_0 = arith.constant 0 : i32
    %c0_i32_1 = arith.constant 0 : i32
    return %c0_i32, %c0_i32_0 : i32, i32
  }
  func.func @transform_4(%arg0: i32) -> (i32, i32) {
    %c0_i32 = arith.constant 0 : i32
    %c0_i32_0 = arith.constant 0 : i32
    %c0_i32_1 = arith.constant 0 : i32
    return %c0_i32, %c0_i32_0 : i32, i32
  }
  func.func @transform_5(%arg0: i32) -> (i32, i32) {
    %c0_i32 = arith.constant 0 : i32
    %c0_i32_0 = arith.constant 0 : i32
    return %arg0, %c0_i32 : i32, i32
  }
}

</mosaic_0001>

<bundles_post_ra>
// kernel: tpu_custom_call.1
= control target key start
LH: loop header
LB: loop body
LE: loop exit
PB: predicated region body
PF: predicated region fallthrough
CT: control target
= control target key end

     0   :  { %10 = vsyncpa [#allocation3], 0  ;;  %s263_s0 = inlined_call_operand.vmem [shape: f32[8,2], index: 0, kind: input, shape index: {}]   ;;  %s264_s1 = inlined_call_operand.vmem [shape: f32[2,128], index: 1, kind: input, shape index: {}]   ;;  %s265_s2 = inlined_call_operand.vmem [shape: f32[1,128], index: 2, kind: input, shape index: {}]   ;;  %s266_s3 = inlined_call_operand.hbm [shape: f32[128,128], index: 3, kind: input, shape index: {}]   ;;  %s267_s4 = inlined_call_operand.vmem [shape: f32[1,128], index: 4, kind: input, shape index: {}]   ;;  %s268_s5 = inlined_call_operand.hbm [shape: f32[8,128], index: 5, kind: output, shape index: {}]  }
   0x1   :  { %11 = vsyncpa [#allocation4], 0  ;;  %s22_s20 = sshll.u32 %s266_s3, 4  ;;  %s206_s21 = smov [#allocation2]   ;;  %s23_s20 = int_to_ptr.hbm [resolvable:$true] %s22_s20 }
   0x2   :  { %s24_s22 = sshll.u32 %s206_s21, 4  ;;  %s207_s23 = smov 128   ;;  %s25_s22 = int_to_ptr.vmem [resolvable:$true] %s24_s22 }
   0x3   :  { %s208_s24 = smov 8  }
   0x4   :  { %30 = dma.hbm_to_vmem [thread:$0]  %s23_s20, 2048, %s25_s22, [#allocation3], %s207_s23, %s207_s23, %s208_s24  }
   0x5   :  { %202 = dma.done.wait [#allocation3], 2048  }
   0x6   :  { %203 = vsyncadd [#allocation3], 4294965248  ;;  %v209_v0 = vmov 0   ;;  %v37_v1 = vld [vmem:[%s263_s0] sm:$0xff]  ;;  %v75_v2 = vld [vmem:[#allocation2 + $0x78] sm:$0xff]  ;;  %v210_v8 = vmov 1  }
   0x7   :  { %144 = vset.pattern.permute.xlu0 %v209_v0  ;;  %v74_v3 = vld [vmem:[#allocation2 + $0x70] sm:$0xff]  ;;  %80 = vmatpush.msra.mxu0 %v75_v2  ;;  %v73_v4 = vld [vmem:[#allocation2 + $0x68] sm:$0xff]  ;;  %v72_v5 = vld [vmem:[#allocation2 + $0x60] sm:$0xff] }
   0x8   :  { %41 = vperm.xlu0 %144, %v37_v1   ;;  %v71_v6 = vld [vmem:[#allocation2 + $0x58] sm:$0xff]  ;;  %v70_v7 = vld [vmem:[#allocation2 + $0x50] sm:$0xff]  ;;  %v69_v9 = vld [vmem:[#allocation2 + $0x48] sm:$0xff] }
   0x9   :  { %81 = vmatpush.msra.mxu0 %v74_v3  ;;  %v68_v10 = vld [vmem:[#allocation2 + $0x40] sm:$0xff]  ;;  %v67_v11 = vld [vmem:[#allocation2 + $0x38] sm:$0xff]  ;;  %v66_v12 = vld [vmem:[#allocation2 + $0x30] sm:$0xff] }
   0xa   :  { %v65_v13 = vld [vmem:[#allocation2 + $0x28] sm:$0xff]  ;;  %v64_v14 = vld [vmem:[#allocation2 + $0x20] sm:$0xff]  ;;  %v63_v15 = vld [vmem:[#allocation2 + $0x18] sm:$0xff] }
   0xb   :  { %82 = vmatpush.msra.mxu0 %v73_v4  ;;  %v62_v16 = vld [vmem:[#allocation2 + $0x10] sm:$0xff]  ;;  %v61_v17 = vld [vmem:[#allocation2 + $0x8] sm:$0xff]  ;;  %v60_v18 = vld [vmem:[#allocation2] sm:$0xff] }
   0xc   :  { %v146_v20 = vld [vmem:[%s264_s1] ss:$0 sm:$0xff]  ;;  %v147_v21 = vld [vmem:[%s264_s1 + $0x1] ss:$0 sm:$0xff]  ;;  %s211_s1 = smov [#allocation5]  }
   0xd   :  { %83 = vmatpush.msra.mxu0 %v72_v5  ;;  %v148_v25 = vld [vmem:[%s265_s2] ss:$0 sm:$0xff]  ;;  %s125_s2 = sshll.u32 %s211_s1, 4  ;;  %s126_s2 = int_to_ptr.vmem [resolvable:$true] %s125_s2 }
   0xe   :  { %v149_v29 = vld [vmem:[%s267_s4] ss:$0 sm:$0xff]  ;;  %s127_s4 = sshll.u32 %s268_s5, 4  ;;  %s128_s4 = int_to_ptr.hbm [resolvable:$true] %s127_s4 }
   0xf   :  { %84 = vmatpush.msra.mxu0 %v71_v6 }
  0x10   :  { %145 = vset.pattern.permute.xlu0 %v210_v8 }
  0x11   :  { %48 = vperm.xlu0 %145, %v37_v1   ;;  %85 = vmatpush.msra.mxu0 %v70_v7 }
  0x13   :  { %86 = vmatpush.msra.mxu0 %v69_v9 }
  0x15   :  { %87 = vmatpush.msra.mxu0 %v68_v10 }
  0x17   :  { %88 = vmatpush.msra.mxu0 %v67_v11 }
  0x19   :  { %89 = vmatpush.msra.mxu0 %v66_v12 }
  0x1b   :  { %90 = vmatpush.msra.mxu0 %v65_v13 }
  0x1d   :  { %91 = vmatpush.msra.mxu0 %v64_v14 }
  0x1f   :  { %92 = vmatpush.msra.mxu0 %v63_v15 }
  0x21   :  { %93 = vmatpush.msra.mxu0 %v62_v16 }
  0x23   :  { %94 = vmatpush.msra.mxu0 %v61_v17 }
  0x25   :  { %95 = vmatpush.msra.mxu0 %v60_v18 }
  0x7a   :  { %v42_v19 = vpop.permute.xlu0 %41 }
  0x7b   :  { %v45_v23 = vmul.f32 %v146_v20, %v42_v19 }
  0x83   :  { %v49_v22 = vpop.permute.xlu0 %48 }
  0x84   :  { %v52_v24 = vmul.f32 %v147_v21, %v49_v22 }
  0x86   :  { %v53_v26 = vadd.f32 %v52_v24, %v45_v23 }
  0x88   :  { %v58_v27 = vadd.f32 %v148_v25, %v53_v26 }
  0x8a   :  { %v59_v28 = vmax.f32 %v58_v27, 0.0 }
  0x8c   :  { %96 = vmatmul.f32.vlgmr.msra.gmra.mxu0 %v59_v28 }
 0x109   :  { %v97_v30 = vpop.f32.mrf.mxu0 }
 0x10a   :  { %v98_v31 = vadd.f32 %v149_v29, %v97_v30 }
 0x10c   :  { %v137_v32 = vmul.f32 -1.442695, %v98_v31 }
 0x10e   :  { %150 = vpow2.f32 %v137_v32 }
 0x114   :  { %v151_v33 = vpop.eup %150 }
 0x115   :  { %v103_v34 = vadd.f32 1.0, %v151_v33 }
 0x117   :  { %152 = vrcp.f32 %v103_v34  ;;  %v115_v38 = vand.u32 2147483648, %v103_v34  ;;  %v113_v40 = vand.u32 2147483647, %v103_v34  ;;  %vm109_vm1 = vweird.f32 %v103_v34 }
 0x119   :  { %v116_v42 = vor.u32 1.1754944e-38, %v115_v38  ;;  %vm114_vm3 = vcmp.eq.f32.partialorder %v113_v40, 8.507059e+37 }
 0x11d   :  { %v153_v35 = vpop.eup %152 }
 0x11e   :  { %v105_v36 = vmul.f32 %v153_v35, %v103_v34  ;;  %vm110_vm0 = vweird.f32 %v153_v35 }
 0x11f   :  { %vm111_vm2 = vmor %vm109_vm1, %vm110_vm0 }
 0x120   :  { %v106_v37 = vsub.f32 1.0, %v105_v36 }
 0x122   :  { %v107_v39 = vmul.f32 %v153_v35, %v106_v37 }
 0x124   :  { %v108_v41 = vadd.f32 %v153_v35, %v107_v39 }
 0x126   :  { %v112_v43 = vsel %vm111_vm2, %v153_v35, %v108_v41 }
 0x127   :  { %v117_v44 = vsel %vm114_vm3, %v116_v42, %v112_v43 }
 0x128   :  { %119 = vst [vmem:[#allocation5] sm:$0xff] %v117_v44 }
 0x129   :  { %130 = dma.vmem_to_hbm [thread:$0]  %s126_s2, 128, %s128_s4, [#allocation4]  }
 0x12a   :  { %204 = dma.done.wait [#allocation4], 128  }
 0x12b   :  { %205 = vsyncadd [#allocation4], 4294967168 }
 0x12c   :  { %135 = vsyncpa [#allocation3], 1 }
 0x12d   :  { %136 = vsyncpa [#allocation4], 1 }

</bundles_post_ra>
